<compile_context>
chip_gen: v7x
topology: tpu7x:2x2x1
jax: 0.10.0
libtpu: 0.0.40
codegen_flags: <defaults>
</compile_context>

<pallas_src>
import functools
import math

import jax
import jax.numpy as jnp
from jax.experimental import pallas as pl
from jax.experimental.pallas import tpu as pltpu

_LN_EPS = 1e-5          # PyTorch nn.LayerNorm default
_NEG_INF = -1e9


# ----------------------------------------------------------------------------
# Per-generation tuning (VMEM budget + row-tile cap).
# ----------------------------------------------------------------------------
@functools.lru_cache(maxsize=1)
def _tpu_vmem_capacity():
    try:
        return int(pltpu.get_tpu_info().vmem_capacity_bytes)
    except Exception:
        return 128 * 1024 * 1024  # conservative default (v5e/v6e)


def _vmem_limit_bytes():
    # ~75% of physical scoped VMEM, capped at 100 MiB (v5e/v6e -> 96 MiB, v7x -> 48 MiB).
    return min((_tpu_vmem_capacity() * 3) // 4, 100 * 1024 * 1024)


def _tq_cap():
    # Larger row tiles on 128 MiB parts; keep v7x (64 MiB) conservative.
    return 512 if _tpu_vmem_capacity() >= (96 << 20) else 128


def _row_tile(n, cap):
    """Largest candidate query-row tile <= cap that divides n."""
    for t in (512, 256, 128, 64, 32, 16, 8):
        if t <= cap and t <= n and n % t == 0:
            return t
    return n


def _rep_spec(arr):
    """Replicated (grid-invariant) parameter block, single-buffered when supported."""
    idx = lambda b, j, _n=arr.ndim: (0,) * _n
    try:
        return pl.BlockSpec(arr.shape, idx, pipeline_mode=pl.Buffered(1))
    except (AttributeError, TypeError):
        return pl.BlockSpec(arr.shape, idx)


# ----------------------------------------------------------------------------
# In-kernel helpers.
# ----------------------------------------------------------------------------
def _layer_norm(x, gamma_ref, beta_ref):
    mu = jnp.mean(x, axis=-1, keepdims=True)
    var = jnp.mean((x - mu) ** 2, axis=-1, keepdims=True)
    return (x - mu) * jax.lax.rsqrt(var + _LN_EPS) * gamma_ref[...] + beta_ref[...]


def _attention(q_in, k_bf, v_bf, mask, wq_ref, bq_ref, wo_ref, bo_ref,
               num_heads, d_head, attn_ref):
    """Multi-head attention of a (TQ, D) query tile against precomputed bf16 K/V (S_kv, D)."""
    scale = 1.0 / math.sqrt(d_head)
    q = jnp.dot(q_in.astype(jnp.bfloat16), wq_ref[...],
                preferred_element_type=jnp.float32) + bq_ref[...]
    q = q * scale
    # TODO(synk): when d_head is not a multiple of 128, pre-permute wq/wk/wv host-side
    # to a head-major layout so the per-head slice below is lane-aligned (no XLU shuffles).
    ctx_heads = []
    for h in range(num_heads):                       # static unroll over heads
        sl = slice(h * d_head, (h + 1) * d_head)
        qh = q[:, sl].astype(jnp.bfloat16)
        kh = k_bf[:, sl]
        vh = v_bf[:, sl]
        # q @ k^T via contracting-dim dot_general (no transpose materialized).
        s = jax.lax.dot_general(qh, kh, (((1,), (1,)), ((), ())),
                                preferred_element_type=jnp.float32)
        if mask is not None:
            s = s + mask
        s = s - jnp.max(s, axis=-1, keepdims=True)
        p = jnp.exp(s)
        p = p / jnp.sum(p, axis=-1, keepdims=True)   # exact softmax: rows sum to 1
        ctx_heads.append(jnp.dot(p.astype(jnp.bfloat16), vh,
                                 preferred_element_type=jnp.float32))
        if attn_ref is not None:                     # only the last block's cross-attn
            attn_ref[0, h] = p
    # Lane-dense (TQ, D) context assembled in-register (no masked partial stores).
    ctx = jnp.concatenate(ctx_heads, axis=-1)
    return jnp.dot(ctx.astype(jnp.bfloat16), wo_ref[...],
                   preferred_element_type=jnp.float32) + bo_ref[...]


# ----------------------------------------------------------------------------
# K/V projection kernel: run once per (block, source) pair — NOT per query tile.
# ----------------------------------------------------------------------------
def _kv_proj_kernel(x_ref, wk_ref, bk_ref, wv_ref, bv_ref, k_ref, v_ref):
    x = x_ref[0].astype(jnp.bfloat16)
    k = jnp.dot(x, wk_ref[...], preferred_element_type=jnp.float32) + bk_ref[...]
    v = jnp.dot(x, wv_ref[...], preferred_element_type=jnp.float32) + bv_ref[...]
    k_ref[0] = k.astype(k_ref.dtype)
    v_ref[0] = v.astype(v_ref.dtype)


def _kv_project(x, wk, bk, wv, bv):
    B, S, D = x.shape
    TR = _row_tile(S, _tq_cap())
    k, v = pl.pallas_call(
        _kv_proj_kernel,
        out_shape=(jax.ShapeDtypeStruct((B, S, D), jnp.bfloat16),
                   jax.ShapeDtypeStruct((B, S, D), jnp.bfloat16)),
        grid=(B, S // TR),
        in_specs=[pl.BlockSpec((1, TR, D), lambda b, r: (b, r, 0)),
                  _rep_spec(wk), _rep_spec(bk), _rep_spec(wv), _rep_spec(bv)],
        out_specs=(pl.BlockSpec((1, TR, D), lambda b, r: (b, r, 0)),
                   pl.BlockSpec((1, TR, D), lambda b, r: (b, r, 0))),
        compiler_params=pltpu.CompilerParams(
            dimension_semantics=("parallel", "parallel"),
            vmem_limit_bytes=_vmem_limit_bytes()),
    )(x, wk, bk, wv, bv)
    return k, v


# ----------------------------------------------------------------------------
# Fused decoder-block kernel: self-attn -> +res -> LN1 -> cross-attn -> +res ->
# LN2 -> FFN -> +res -> LN3, for one (batch, query-row-tile) grid program.
# ----------------------------------------------------------------------------
def _decoder_block_kernel(num_heads, d_head, tq, has_dec_mask, has_mem_mask,
                          emit_attn, *refs):
    it = iter(refs)
    x_q_ref = next(it)                    # (1, TQ, D)   query-row tile of activations
    ks_ref = next(it); vs_ref = next(it)  # (1, S, D)    precomputed self-attn K/V (bf16)
    kc_ref = next(it); vc_ref = next(it)  # (1, S_enc,D) precomputed cross-attn K/V (bf16)
    dmask_ref = next(it) if has_dec_mask else None
    mmask_ref = next(it) if has_mem_mask else None
    (wq1, bq1, wo1, bo1, g1, be1,
     wq2, bq2, wo2, bo2, g2, be2,
     w1, b1, w2, b2, g3, be3) = [next(it) for _ in range(18)]
    out_ref = next(it)
    attn_ref = next(it) if emit_attn else None

    x_q = x_q_ref[0].astype(jnp.float32)
    k_self, v_self = ks_ref[0], vs_ref[0]
    k_cross, v_cross = kc_ref[0], vc_ref[0]
    s_kv = k_self.shape[0]

    if has_dec_mask:
        dmask = dmask_ref[0]
    else:
        # Causal mask generated in-kernel: no O(B*S^2) HBM mask traffic.
        qi = pl.program_id(1)
        row = jax.lax.broadcasted_iota(jnp.int32, (tq, s_kv), 0) + qi * tq
        col = jax.lax.broadcasted_iota(jnp.int32, (tq, s_kv), 1)
        dmask = jnp.where(col <= row, 0.0, _NEG_INF).astype(jnp.float32)
    mmask = mmask_ref[0] if has_mem_mask else None

    # Self-attention + residual + LayerNorm1
    # TODO(synk): exploit causality (bound self-attn KV extent to (qi+1)*TQ) and stream
    # K/V flash-style (online softmax) for very long S / v7x VMEM limits.
    a1 = _attention(x_q, k_self, v_self, dmask, wq1, bq1, wo1, bo1,
                    num_heads, d_head, None)
    x1 = _layer_norm(a1 + x_q, g1, be1)

    # Cross-attention + residual + LayerNorm2 (probabilities emitted only when requested)
    a2 = _attention(x1, k_cross, v_cross, mmask, wq2, bq2, wo2, bo2,
                    num_heads, d_head, attn_ref)
    x2 = _layer_norm(a2 + x1, g2, be2)

    # FFN (Linear -> ReLU -> Linear) + residual + LayerNorm3
    # TODO(synk): at production D/hidden sizes on v7x, k-tile the hidden dim with a
    # reduction axis instead of keeping full (D,H)/(H,D) weights + (TQ,H) intermediate.
    h = jnp.dot(x2.astype(jnp.bfloat16), w1[...],
                preferred_element_type=jnp.float32) + b1[...]
    h = jnp.maximum(h, 0.0)
    f = jnp.dot(h.astype(jnp.bfloat16), w2[...],
                preferred_element_type=jnp.float32) + b2[...]
    out_ref[0] = _layer_norm(f + x2, g3, be3).astype(out_ref.dtype)


def decoder_block_forward(x, enc, decoder_mask, memory_mask, blk, num_heads,
                          emit_attn, out_dtype):
    B, S, D = x.shape
    S_enc = enc.shape[1]
    d_head = D // num_heads
    TQ = _row_tile(S, _tq_cap())
    grid = (B, S // TQ)

    sa, ca, ffn = blk["mhsa1"], blk["mhsa2"], blk["ffn"]
    ln1, ln2, ln3 = blk["ln1"], blk["ln2"], blk["ln3"]

    # Hoisted K/V projections: computed once per block, carried in bf16.
    k_self, v_self = _kv_project(x, sa["wk"], sa["bk"], sa["wv"], sa["bv"])
    k_cross, v_cross = _kv_project(enc, ca["wk"], ca["bk"], ca["wv"], ca["bv"])

    has_dec_mask = decoder_mask is not None
    has_mem_mask = memory_mask is not None

    inputs, in_specs = [], []

    def add(arr, spec):
        inputs.append(arr)
        in_specs.append(spec)

    add(x,       pl.BlockSpec((1, TQ, D),    lambda b, qi: (b, qi, 0)))
    add(k_self,  pl.BlockSpec((1, S, D),     lambda b, qi: (b, 0, 0)))
    add(v_self,  pl.BlockSpec((1, S, D),     lambda b, qi: (b, 0, 0)))
    add(k_cross, pl.BlockSpec((1, S_enc, D), lambda b, qi: (b, 0, 0)))
    add(v_cross, pl.BlockSpec((1, S_enc, D), lambda b, qi: (b, 0, 0)))
    if has_dec_mask:
        add(decoder_mask, pl.BlockSpec((1, TQ, S), lambda b, qi: (b, qi, 0)))
    if has_mem_mask:
        add(memory_mask, pl.BlockSpec((1, TQ, S_enc), lambda b, qi: (b, qi, 0)))

    param_arrays = [
        sa["wq"], sa["bq"], sa["wo"], sa["bo"], ln1["gamma"], ln1["beta"],
        ca["wq"], ca["bq"], ca["wo"], ca["bo"], ln2["gamma"], ln2["beta"],
        ffn["w1"], ffn["b1"], ffn["w2"], ffn["b2"], ln3["gamma"], ln3["beta"],
    ]
    for a in param_arrays:
        add(a, _rep_spec(a))

    out_shapes = [jax.ShapeDtypeStruct((B, S, D), out_dtype)]
    out_specs = [pl.BlockSpec((1, TQ, D), lambda b, qi: (b, qi, 0))]
    if emit_attn:
        out_shapes.append(jax.ShapeDtypeStruct((B, num_heads, S, S_enc), jnp.float32))
        out_specs.append(
            pl.BlockSpec((1, num_heads, TQ, S_enc), lambda b, qi: (b, 0, qi, 0)))

    kernel = functools.partial(_decoder_block_kernel, num_heads, d_head, TQ,
                               has_dec_mask, has_mem_mask, emit_attn)
    result = pl.pallas_call(
        kernel,
        out_shape=tuple(out_shapes),
        grid=grid,
        in_specs=in_specs,
        out_specs=tuple(out_specs),
        compiler_params=pltpu.CompilerParams(
            dimension_semantics=("parallel", "parallel"),
            vmem_limit_bytes=_vmem_limit_bytes()),
    )(*inputs)
    if emit_attn:
        return result[0], result[1]
    return result[0], None


# ----------------------------------------------------------------------------
# Parameter init (deterministic) and full decoder forward (glue in plain JAX).
# ----------------------------------------------------------------------------
def init_params(key, num_blocks, d_model, num_heads, hidden_dim, vocab, max_seq_len):
    keys = iter(jax.random.split(key, 2 + 10 * num_blocks))

    def dense(shape, dtype=jnp.bfloat16, scale=0.02):
        w = scale * jax.random.normal(next(keys), shape, dtype=jnp.float32)
        return w.astype(dtype)

    def mhsa_params():
        return {
            "wq": dense((d_model, d_model)), "bq": jnp.zeros((1, d_model), jnp.float32),
            "wk": dense((d_model, d_model)), "bk": jnp.zeros((1, d_model), jnp.float32),
            "wv": dense((d_model, d_model)), "bv": jnp.zeros((1, d_model), jnp.float32),
            "wo": dense((d_model, d_model)), "bo": jnp.zeros((1, d_model), jnp.float32),
        }

    def ln_params():
        return {"gamma": jnp.ones((1, d_model), jnp.float32),
                "beta": jnp.zeros((1, d_model), jnp.float32)}

    params = {
        "token_embed": dense((vocab, d_model), dtype=jnp.float32),
        "pos_embed": dense((max_seq_len, d_model), dtype=jnp.float32),
        "blocks": [],
    }
    for _ in range(num_blocks):
        params["blocks"].append({
            "mhsa1": mhsa_params(),
            "mhsa2": mhsa_params(),
            "ffn": {
                "w1": dense((d_model, hidden_dim)),
                "b1": jnp.zeros((1, hidden_dim), jnp.float32),
                "w2": dense((hidden_dim, d_model)),
                "b2": jnp.zeros((1, d_model), jnp.float32),
            },
            "ln1": ln_params(), "ln2": ln_params(), "ln3": ln_params(),
        })
    return params


def decoder_forward(params, encoder_output, target, decoder_mask, memory_mask, num_heads):
    """decoder_mask=None -> causal mask generated in-kernel; memory_mask=None -> no mask."""
    B, S = target.shape
    tok = jnp.take(params["token_embed"], target, axis=0)          # (B, S, D) gather in JAX
    # TODO(synk): the reference pos_idx arange/repeat/reshape is shape-inconsistent;
    # using the intended per-row positions arange(S) (S <= max_seq_len).
    pos = params["pos_embed"][:S][None, :, :]                      # (1, S, D)
    x = (tok + pos).astype(jnp.bfloat16)     # activations carried bf16 between blocks
    enc = encoder_output.astype(jnp.bfloat16)
    weights = None
    last = len(params["blocks"]) - 1
    for i, blk in enumerate(params["blocks"]):
        out_dtype = jnp.float32 if i == last else jnp.bfloat16
        x, w = decoder_block_forward(x, enc, decoder_mask, memory_mask, blk, num_heads,
                                     emit_attn=(i == last), out_dtype=out_dtype)
        if w is not None:
            weights = w
    return x, weights


if __name__ == "__main__":
    # Small, module-consistent shapes.
    num_blocks = 2
    d_model = 32
    num_heads = 4
    hidden_dim = 64
    vocab = 50
    max_seq_len = 8
    B, S, S_enc = 2, 8, 8
    assert d_model % num_heads == 0

    root = jax.random.PRNGKey(0)
    k_param, k_tgt, k_enc = jax.random.split(root, 3)

    params = init_params(k_param, num_blocks, d_model, num_heads, hidden_dim,
                         vocab, max_seq_len)
    target = jax.random.randint(k_tgt, (B, S), 0, vocab, dtype=jnp.int32)
    encoder_output = jax.random.normal(k_enc, (B, S_enc, d_model), dtype=jnp.float32)

    # Fast path: None masks => causal decoder mask generated in-kernel, no memory mask.
    out, attn_w = decoder_forward(params, encoder_output, target, None, None, num_heads)
    out = jax.block_until_ready(out)
    attn_w = jax.block_until_ready(attn_w)

    # General path: explicit additive masks streamed from HBM (module-equivalent inputs).
    causal = jnp.where(jnp.tril(jnp.ones((S, S), dtype=bool)), 0.0, _NEG_INF)
    decoder_mask = jnp.broadcast_to(causal.astype(jnp.float32), (B, S, S))
    memory_mask = jnp.zeros((B, S, S_enc), dtype=jnp.float32)
    out2, attn_w2 = decoder_forward(params, encoder_output, target,
                                    decoder_mask, memory_mask, num_heads)
    out2 = jax.block_until_ready(out2)
    attn_w2 = jax.block_until_ready(attn_w2)

    assert out.shape == (B, S, d_model) and out.dtype == jnp.float32
    assert attn_w.shape == (B, num_heads, S, S_enc) and attn_w.dtype == jnp.float32
    # Both mask paths must agree, and attention rows must sum to 1 (exact softmax).
    assert jnp.allclose(out, out2, atol=1e-4, rtol=1e-4)
    assert jnp.allclose(attn_w, attn_w2, atol=1e-4, rtol=1e-4)
    assert jnp.allclose(jnp.sum(attn_w, axis=-1), 1.0, atol=1e-4)
    print("KERNEL_OK")
</pallas_src>

<mosaic_0001>
module attributes {stable_mosaic.version = 11 : i64} {
  func.func @_kv_proj_kernel(%arg0: i32, %arg1: i32, %arg2: memref<1x8x32xbf16, #tpu.memory_space<vmem>>, %arg3: memref<32x32xbf16, #tpu.memory_space<vmem>>, %arg4: memref<1x32xf32, #tpu.memory_space<vmem>>, %arg5: memref<32x32xbf16, #tpu.memory_space<vmem>>, %arg6: memref<1x32xf32, #tpu.memory_space<vmem>>, %arg7: memref<1x8x32xbf16, #tpu.memory_space<vmem>>, %arg8: memref<1x8x32xbf16, #tpu.memory_space<vmem>>) attributes {dimension_semantics = [#tpu.dimension_semantics<parallel>, #tpu.dimension_semantics<parallel>], iteration_bounds = array<i64: 2, 1>, scalar_prefetch = 0 : i64, scratch_operands = 0 : i64, tpu.core_type = #tpu.core_type<tc>, window_params = [{transform_indices = @transform_0, window_bounds = array<i64: 1, 8, 32>}, {pipeline_mode = #tpu.pipeline_mode<synchronous>, transform_indices = @transform_1, window_bounds = array<i64: 32, 32>}, {pipeline_mode = #tpu.pipeline_mode<synchronous>, transform_indices = @transform_2, window_bounds = array<i64: 1, 32>}, {pipeline_mode = #tpu.pipeline_mode<synchronous>, transform_indices = @transform_3, window_bounds = array<i64: 32, 32>}, {pipeline_mode = #tpu.pipeline_mode<synchronous>, transform_indices = @transform_4, window_bounds = array<i64: 1, 32>}, {transform_indices = @transform_5, window_bounds = array<i64: 1, 8, 32>}, {transform_indices = @transform_6, window_bounds = array<i64: 1, 8, 32>}]} {
    %c0 = arith.constant 0 : index
    %c0_0 = arith.constant 0 : index
    %c0_1 = arith.constant 0 : index
    %0 = vector.load %arg2[%c0, %c0_0, %c0_1] : memref<1x8x32xbf16, #tpu.memory_space<vmem>>, vector<1x8x32xbf16>
    %1 = vector.shape_cast %0 : vector<1x8x32xbf16> to vector<8x32xbf16>
    %c0_2 = arith.constant 0 : index
    %c0_3 = arith.constant 0 : index
    %2 = vector.load %arg3[%c0_2, %c0_3] : memref<32x32xbf16, #tpu.memory_space<vmem>>, vector<32x32xbf16>
    %cst = arith.constant dense<0.000000e+00> : vector<8x32xf32>
    %3 = tpu.matmul %1, %2, %cst {dimension_numbers = #tpu.dot_dimension_numbers<[1], [0], [0], [1], [0, 0, 1, 1], [], []>} : vector<8x32xbf16>, vector<32x32xbf16>, vector<8x32xf32> -> vector<8x32xf32>
    %c0_4 = arith.constant 0 : index
    %c0_5 = arith.constant 0 : index
    %4 = vector.load %arg4[%c0_4, %c0_5] : memref<1x32xf32, #tpu.memory_space<vmem>>, vector<1x32xf32>
    %5 = vector.broadcast %4 : vector<1x32xf32> to vector<8x32xf32>
    %6 = arith.addf %3, %5 : vector<8x32xf32>
    %c0_6 = arith.constant 0 : index
    %c0_7 = arith.constant 0 : index
    %7 = vector.load %arg5[%c0_6, %c0_7] : memref<32x32xbf16, #tpu.memory_space<vmem>>, vector<32x32xbf16>
    %cst_8 = arith.constant dense<0.000000e+00> : vector<8x32xf32>
    %8 = tpu.matmul %1, %7, %cst_8 {dimension_numbers = #tpu.dot_dimension_numbers<[1], [0], [0], [1], [0, 0, 1, 1], [], []>} : vector<8x32xbf16>, vector<32x32xbf16>, vector<8x32xf32> -> vector<8x32xf32>
    %c0_9 = arith.constant 0 : index
    %c0_10 = arith.constant 0 : index
    %9 = vector.load %arg6[%c0_9, %c0_10] : memref<1x32xf32, #tpu.memory_space<vmem>>, vector<1x32xf32>
    %10 = vector.broadcast %9 : vector<1x32xf32> to vector<8x32xf32>
    %11 = arith.addf %8, %10 : vector<8x32xf32>
    %12 = arith.truncf %6 : vector<8x32xf32> to vector<8x32xbf16>
    %c0_11 = arith.constant 0 : index
    %c0_12 = arith.constant 0 : index
    %c0_13 = arith.constant 0 : index
    %13 = vector.load %arg7[%c0_11, %c0_12, %c0_13] : memref<1x8x32xbf16, #tpu.memory_space<vmem>>, vector<1x8x32xbf16>
    %14 = vector.shape_cast %13 : vector<1x8x32xbf16> to vector<8x32xbf16>
    %15 = vector.shape_cast %12 : vector<8x32xbf16> to vector<1x8x32xbf16>
    tpu.vector_store %arg7[%c0_11, %c0_12, %c0_13], %15 {strides = array<i32>} : memref<1x8x32xbf16, #tpu.memory_space<vmem>>, vector<1x8x32xbf16>,
    %16 = arith.truncf %11 : vector<8x32xf32> to vector<8x32xbf16>
    %c0_14 = arith.constant 0 : index
    %c0_15 = arith.constant 0 : index
    %c0_16 = arith.constant 0 : index
    %17 = vector.load %arg8[%c0_14, %c0_15, %c0_16] : memref<1x8x32xbf16, #tpu.memory_space<vmem>>, vector<1x8x32xbf16>
    %18 = vector.shape_cast %17 : vector<1x8x32xbf16> to vector<8x32xbf16>
    %19 = vector.shape_cast %16 : vector<8x32xbf16> to vector<1x8x32xbf16>
    tpu.vector_store %arg8[%c0_14, %c0_15, %c0_16], %19 {strides = array<i32>} : memref<1x8x32xbf16, #tpu.memory_space<vmem>>, vector<1x8x32xbf16>,
    return
  }
  func.func @transform_0(%arg0: i32, %arg1: i32) -> (i32, i32, i32) {
    %c0_i32 = arith.constant 0 : i32
    %c0_i32_0 = arith.constant 0 : i32
    return %arg0, %arg1, %c0_i32 : i32, i32, i32
  }
  func.func @transform_1(%arg0: i32, %arg1: i32) -> (i32, i32) {
    %c0_i32 = arith.constant 0 : i32
    %c0_i32_0 = arith.constant 0 : i32
    %c0_i32_1 = arith.constant 0 : i32
    return %c0_i32, %c0_i32_0 : i32, i32
  }
  func.func @transform_2(%arg0: i32, %arg1: i32) -> (i32, i32) {
    %c0_i32 = arith.constant 0 : i32
    %c0_i32_0 = arith.constant 0 : i32
    %c0_i32_1 = arith.constant 0 : i32
    return %c0_i32, %c0_i32_0 : i32, i32
  }
  func.func @transform_3(%arg0: i32, %arg1: i32) -> (i32, i32) {
    %c0_i32 = arith.constant 0 : i32
    %c0_i32_0 = arith.constant 0 : i32
    %c0_i32_1 = arith.constant 0 : i32
    return %c0_i32, %c0_i32_0 : i32, i32
  }
  func.func @transform_4(%arg0: i32, %arg1: i32) -> (i32, i32) {
    %c0_i32 = arith.constant 0 : i32
    %c0_i32_0 = arith.constant 0 : i32
    %c0_i32_1 = arith.constant 0 : i32
    return %c0_i32, %c0_i32_0 : i32, i32
  }
  func.func @transform_5(%arg0: i32, %arg1: i32) -> (i32, i32, i32) {
    %c0_i32 = arith.constant 0 : i32
    %c0_i32_0 = arith.constant 0 : i32
    return %arg0, %arg1, %c0_i32 : i32, i32, i32
  }
  func.func @transform_6(%arg0: i32, %arg1: i32) -> (i32, i32, i32) {
    %c0_i32 = arith.constant 0 : i32
    %c0_i32_0 = arith.constant 0 : i32
    return %arg0, %arg1, %c0_i32 : i32, i32, i32
  }
}

</mosaic_0001>

<bundles_post_ra>
// kernel: tpu_custom_call.1
= control target key start
LH: loop header
LB: loop body
LE: loop exit
PB: predicated region body
PF: predicated region fallthrough
CT: control target
= control target key end

     0   :  { %s1490_s0 = inlined_call_operand.hbm [shape: bf16[2,8,32], index: 0, kind: input, shape index: {}]   ;;  %s1491_s1 = inlined_call_operand.hbm [shape: bf16[32,32], index: 1, kind: input, shape index: {}]   ;;  %s1492_s2 = inlined_call_operand.hbm [shape: f32[1,32], index: 2, kind: input, shape index: {}]   ;;  %s1493_s3 = inlined_call_operand.hbm [shape: bf16[32,32], index: 3, kind: input, shape index: {}]   ;;  %s1494_s4 = inlined_call_operand.hbm [shape: f32[1,32], index: 4, kind: input, shape index: {}]   ;;  %s1495_s5 = inlined_call_operand.hbm [shape: bf16[2,8,32], index: 5, kind: output, shape index: {0}]   ;;  %s1496_s6 = inlined_call_operand.hbm [shape: bf16[2,8,32], index: 6, kind: output, shape index: {1}]  }
   0x1   :  { %1502 = sst [smem:[#allocation19_spill]] %s1491_s1 }
   0x2   :  { %12 = vsyncpa [#allocation3], 0 }
   0x3   :  { %14 = vsyncpa [#allocation3 + $0x1], 0 }
   0x4   :  { %15 = vsyncpa [#allocation6], 0 }
   0x5   :  { %16 = vsyncpa [#allocation9], 0 }
   0x6   :  { %17 = vsyncpa [#allocation4], 0 }
   0x7   :  { %19 = vsyncpa [#allocation4 + $0x1], 0 }
   0x8   :  { %20 = vsyncpa [#allocation13], 0 }
   0x9   :  { %22 = vsyncpa [#allocation13 + $0x1], 0  ;;  %s1155_s21 = smov 0   ;;  %s1157_s22 = smov 0  }
   0xa   :  { %s1159_s23 = smov 0   ;;  %s1161_s24 = smov 0  }
   0xb   :  { %s1163_s25 = smov 0   ;;  %s1165_s26 = smov 0  }
   0xc LB: > { %s1497_s27 = sadd.s32 4294967295, %s1107_s26   ;;  %p675_p0 = scmp.ge.s32.totalorder %s1107_s26, 1  ;;  %s1107_s26 = sphi %s1165_s26, %s28_s26   ;;  %s1103_s25 = sphi %s1163_s25, %s1524_s25   ;;  %s1099_s24 = sphi %s1161_s24, %s1523_s24   ;;  %s1095_s23 = sphi %s1159_s23, %s1522_s23   ;;  %s1091_s22 = sphi %s1157_s22, %s1521_s22   ;;  %s1087_s21 = sphi %s1155_s21, %s1520_s21  }
   0xd   : > { %p1189_p1 = scmp.eq.s32.totalorder %s1497_s27, 0  ;;  %p213_p2 = scmp.lt.s32.totalorder %s1107_s26, 3 }
   0xe   : > { %s1109_s30 = smov [#allocation5]   ;;  %s1110_s9 = smov [#allocation8]  }
   0xf   : > { %s1503_s28 = scalar_select %p1189_p1, 1, 0 }
  0x10   : > { %p1194_p3 = pnand %p675_p0, %p213_p2  ;;  %s225_s7 = sshll.u32 %s1109_s30, 4  ;;  %s1198_s7 = int_to_ptr.vmem [resolvable:$true] %s225_s7 }
  0x11   : > { %s249_s10 = sshll.u32 %s1110_s9, 4  ;;  %s1111_s11 = smov [#allocation7]   ;;  %s1209_s10 = int_to_ptr.vmem [resolvable:$true] %s249_s10 }
  0x12   : > { %s1504_s29 = scalar_select %p1194_p3, 1, 0 }
  0x13   : > { %p749_p4 = pneg %p1194_p3  ;;  %s1211_s12 = sshll.u32 %s1111_s11, 4  ;;  %s240_s12 = int_to_ptr.vmem [resolvable:$true] %s1211_s12 }
  0x14   : > { %s1506_s1 = sld [smem:[#allocation19_spill]] }
  0x15   : > { %p1205_p6 = pnand %p749_p4, %p1189_p1 }
  0x17   : > { %p1221_p8 = pneg %p1205_p6 }
  0x1a   : > { %s843_s15 = scalar_lea.hbm %s1506_s1, 256 }
  0x1b   : > { %p844_p7 = scmp.ne.s32.totalorder %s1506_s1, %s843_s15  ;;  %p850_p11 = scmp.lt.u32.totalorder %s843_s15, %s1506_s1 }
  0x1d   : > { %p846_p9 = pnand %p1221_p8, %p844_p7 }
  0x1f   : > { %p847_p10 = pneg %p846_p9 }
  0x21   : > { %p852_p12 = pnand %p850_p11, %p847_p10 }
  0x23   : > { %855 = shalt.err (!%p852_p12)
}
  0x24   : > { %s856_s30 = scalar_lea.vmem %s1198_s7, 256  ;;  %p864_p4 = scmp.lt.s32.totalorder %s1198_s7, %s1198_s7 }
  0x25   : > { %p857_p13 = scmp.ne.s32.totalorder %s1198_s7, %s856_s30  ;;  %p865_p5 = scmp.lt.s32.totalorder %s856_s30, %s856_s30 }
  0x27   : > { %p859_p0 = pnand %p857_p13, %p1221_p8  ;;  %p866_p7 = por %p865_p5, %p864_p4 }
  0x29   : > { %p860_p2 = pneg %p859_p0 }
  0x2b   : > { %p867_p9 = pnand %p866_p7, %p860_p2 }
  0x2d   : > { %870 = shalt.err (!%p867_p9)
}
  0x2e   : > { %s1112_s9 = smov 64   ;;  %s1113_s11 = smov 4  }
  0x2f   : > { %752 = dma.hbm_to_vmem [thread:$0]  (!%p1205_p6), %s1506_s1, 256, %s1198_s7, [#allocation6], %s1112_s9, %s1112_s9, %s1113_s11  }
  0x30   : > { %s871_s17 = scalar_lea.hbm %s1493_s3, 256 }
  0x31   : > { %p872_p5 = scmp.ne.s32.totalorder %s1493_s3, %s871_s17  ;;  %p878_p12 = scmp.lt.u32.totalorder %s871_s17, %s1493_s3 }
  0x33   : > { %p874_p10 = pnand %p872_p5, %p1221_p8 }
  0x35   : > { %p875_p11 = pneg %p874_p10 }
  0x37   : > { %p880_p13 = pnand %p878_p12, %p875_p11 }
  0x39   : > { %883 = shalt.err (!%p880_p13)
}
  0x3a   : > { %s884_s7 = scalar_lea.vmem %s1209_s10, 256  ;;  %p892_p7 = scmp.lt.s32.totalorder %s1209_s10, %s1209_s10 }
  0x3b   : > { %p885_p0 = scmp.ne.s32.totalorder %s1209_s10, %s884_s7  ;;  %p893_p9 = scmp.lt.s32.totalorder %s884_s7, %s884_s7 }
  0x3d   : > { %p887_p2 = pnand %p885_p0, %p1221_p8  ;;  %p894_p5 = por %p893_p9, %p892_p7 }
  0x3f   : > { %p888_p4 = pneg %p887_p2 }
  0x41   : > { %p895_p10 = pnand %p894_p5, %p888_p4 }
  0x43   : > { %898 = shalt.err (!%p895_p10)
}
  0x44   : > { %758 = dma.hbm_to_vmem [thread:$0]  (!%p1205_p6), %s1493_s3, 256, %s1209_s10, [#allocation9], %s1112_s9, %s1112_s9, %s1113_s11  }
  0x45   : > { %s899_s16 = scalar_lea.hbm %s1492_s2, 16 }
  0x46   : > { %p900_p11 = scmp.ne.s32.totalorder %s1492_s2, %s899_s16  ;;  %p906_p0 = scmp.lt.u32.totalorder %s899_s16, %s1492_s2 }
  0x48   : > { %p902_p12 = pnand %p900_p11, %p1221_p8 }
  0x4a   : > { %p903_p13 = pneg %p902_p12 }
  0x4c   : > { %p908_p2 = pnand %p906_p0, %p903_p13 }
  0x4e   : > { %911 = shalt.err (!%p908_p2)
}
  0x4f   : > { %s912_s7 = scalar_lea.vmem %s240_s12, 16  ;;  %s919_s10 = scalar_lea.vmem %s240_s12, 32 }
  0x50   : > { %p913_p4 = scmp.ne.s32.totalorder %s240_s12, %s912_s7  ;;  %p920_p5 = scmp.lt.s32.totalorder %s240_s12, %s240_s12 }
  0x51   : > { %p921_p10 = scmp.lt.s32.totalorder %s919_s10, %s912_s7 }
  0x52   : > { %p915_p7 = pnand %p913_p4, %p1221_p8 }
  0x53   : > { %p922_p3 = por %p921_p10, %p920_p5 }
  0x54   : > { %p916_p9 = pneg %p915_p7 }
  0x56   : > { %p923_p1 = pnand %p922_p3, %p916_p9 }
  0x58   : > { %926 = shalt.err (!%p923_p1)
}
  0x59   : > { %755 = dma.hbm_to_vmem [thread:$0]  (!%p1205_p6), %s1492_s2, 16, %s240_s12, [#allocation6]  }
  0x5a   : > { %s1114_s27 = smov [#allocation10]   ;;  %s927_s16 = scalar_lea.hbm %s1494_s4, 16 }
  0x5b   : > { %s263_s13 = sshll.u32 %s1114_s27, 4  ;;  %p928_p11 = scmp.ne.s32.totalorder %s1494_s4, %s927_s16  ;;  %s264_s13 = int_to_ptr.vmem [resolvable:$true] %s263_s13 }
  0x5c   : > { %p934_p12 = scmp.lt.u32.totalorder %s927_s16, %s1494_s4 }
  0x5d   : > { %p930_p1 = pnand %p928_p11, %p1221_p8 }
  0x5f   : > { %p931_p3 = pneg %p930_p1 }
  0x61   : > { %p936_p13 = pnand %p934_p12, %p931_p3 }
  0x63   : > { %939 = shalt.err (!%p936_p13)
}
  0x64   : > { %s940_s12 = scalar_lea.vmem %s264_s13, 16  ;;  %s947_s7 = scalar_lea.vmem %s264_s13, 32 }
  0x65   : > { %p941_p0 = scmp.ne.s32.totalorder %s264_s13, %s940_s12  ;;  %p948_p7 = scmp.lt.s32.totalorder %s264_s13, %s264_s13 }
  0x66   : > { %p949_p9 = scmp.lt.s32.totalorder %s947_s7, %s940_s12 }
  0x67   : > { %p943_p2 = pnand %p941_p0, %p1221_p8 }
  0x68   : > { %p950_p5 = por %p949_p9, %p948_p7 }
  0x69   : > { %p944_p4 = pneg %p943_p2 }
  0x6b   : > { %p951_p10 = pnand %p950_p5, %p944_p4 }
  0x6d   : > { %954 = shalt.err (!%p951_p10)
}
  0x6e   : > { %761 = dma.hbm_to_vmem [thread:$0]  (!%p1205_p6), %s1494_s4, 16, %s264_s13, [#allocation9]  }
  0x6f   : > { %s674_s18 = sadd.s32 4294967294, %s1107_s26   ;;  %s40_s11 = sadd.s32 1, %s1103_s25 }
  0x70   : > { %p42_p8 = scmp.ge.s32.totalorder %s40_s11, 2  ;;  %s49_s8 = sadd.s32 1, %s1095_s23 }
  0x71   : > { %p56_p11 = scmp.ne.s32.totalorder %s1095_s23, %s1091_s22  ;;  %p57_p1 = scmp.eq.s32.totalorder %s1107_s26, 0 }
  0x72   : > { %s1526_s11 = smov (%p42_p8, %s40_s11), 0  ;;  %p62_p12 = scmp.ne.s32.totalorder %s1091_s22, %s1087_s21 }
  0x73   : > { %p1310_p3 = por %p57_p1, %p56_p11  ;;  %s44_s13 = ssub.s32 %s1103_s25, %s1526_s11 }
  0x74   : > { %s1509_s14 = sadd.s32 4294967295, %s1107_s26   ;;  %p47_p13 = scmp.eq.s32.totalorder %s44_s13, 0 }
  0x75   : > { %p172_p6 = scmp.eq.s32.totalorder %s1509_s14, 1  ;;  %p1510_p0 = scmp.ne.s32.totalorder %s1503_s28, 0 }
  0x76   : > { %p178_p7 = scmp.eq.s32.totalorder %s674_s18, 1  ;;  %p777_p5 = scmp.lt.s32.totalorder %s1107_s26, 2 }
  0x77   : > { %p1322_p2 = por %p1510_p0, %p62_p12  ;;  %p1326_p4 = por %p172_p6, %p56_p11 }
  0x78   : > { %s1331_s17 = scalar_select %p47_p13, %s1095_s23, %s49_s8  }
  0x79   : > { %s1512_s16 = scalar_select %p1326_p4, 1, 0 }
  0x7a   : > { %p1333_p9 = por %p178_p7, %p62_p12  ;;  %s274_s20 = sand.u32 1, %s1095_s23  }
  0x7b   : > { %s682_s30 = sshll.u32 %s1103_s25, 6  ;;  %s681_s12 = sshll.u32 %s274_s20, 2 }
  0x7c   : > { %s1513_s19 = scalar_select %p1333_p9, 1, 0 }
  0x7d   : > { %s1343_s9 = scalar_lea.hbm %s1490_s0, %s682_s30  ;;  %s278_s18 = scalar_lea.vmem [#allocation2], %s681_s12 }
  0x7e   : > { %s286_s8 = sshll.u32 %s278_s18, 4  ;;  %p1347_p10 = pnand %p777_p5, %p1310_p3  ;;  %s1351_s8 = int_to_ptr.vmem [resolvable:$true] %s286_s8 }
  0x7f   : > { %s275_s14 = scalar_lea.sflag [#allocation3], %s274_s20  ;;  %s955_s1 = scalar_lea.hbm %s1343_s9, 64 }
  0x80   : > { %p956_p8 = scmp.ne.s32.totalorder %s1343_s9, %s955_s1  ;;  %p957_p11 = pneg %p1347_p10 }
  0x81   : > { %s960_s27 = scalar_lea.hbm %s1490_s0, 128  ;;  %p961_p3 = scmp.lt.u32.totalorder %s1343_s9, %s1490_s0 }
  0x82   : > { %p958_p1 = pnand %p957_p11, %p956_p8  ;;  %p962_p6 = scmp.lt.u32.totalorder %s960_s27, %s955_s1 }
  0x83   : > { %p964_p0 = scmp.lt.u32.totalorder %s955_s1, %s1343_s9 }
  0x84   : > { %p959_p12 = pneg %p958_p1  ;;  %p963_p13 = por %p962_p6, %p961_p3 }
  0x86   : > { %p965_p7 = por %p964_p0, %p963_p13 }
  0x88   : > { %p966_p5 = pnand %p965_p7, %p959_p12 }
  0x8a   : > { %969 = shalt.err (!%p966_p5)
}
  0x8b   : > { %s970_s20 = scalar_lea.vmem %s1351_s8, 64  ;;  %s1115_s18 = smov [#allocation2]  }
  0x8c   : > { %p971_p8 = scmp.ne.s32.totalorder %s1351_s8, %s970_s20  ;;  %s975_s30 = sshll.u32 %s1115_s18, 4  ;;  %s976_s30 = int_to_ptr.vmem [resolvable:$false] %s975_s30 }
  0x8d   : > { %s977_s12 = scalar_lea.vmem %s976_s30, 128  ;;  %p978_p4 = scmp.lt.s32.totalorder %s1351_s8, %s976_s30 }
  0x8e   : > { %p973_p1 = pnand %p971_p8, %p957_p11  ;;  %p979_p3 = scmp.lt.s32.totalorder %s977_s12, %s970_s20 }
  0x90   : > { %p974_p9 = pneg %p973_p1  ;;  %p980_p6 = por %p979_p3, %p978_p4 }
  0x92   : > { %p981_p13 = pnand %p980_p6, %p974_p9 }
  0x94   : > { %984 = shalt.err (!%p981_p13)
}
  0x95   : > { %765 = dma.hbm_to_vmem [thread:$0]  (!%p1347_p10), %s1343_s9, 64, %s1351_s8, %s275_s14  }
  0x96   : > { %p1515_p12 = scmp.ne.s32.totalorder %s1504_s29, 0 }
  0x97   : > { %s1381_s1 = sand.u32 (!%p1515_p12), 1, %s1091_s22  }
  0x98   : > { %295 = sbr.rel (%p1515_p12) target bundleno = 428 (0x1ac), region = 40  ;;  %s1384_s27 = sshll.u32 (!%p1515_p12), %s1381_s1, 2 }
  0x99   : > { %s298_s7 = scalar_lea.sflag (!%p1515_p12), [#allocation3], %s1381_s1  ;;  %s301_s10 = scalar_lea.vmem (!%p1515_p12), [#allocation2], %s1384_s27 }
  0x9f   : > { %1066 = dma.done.wait (%p1322_p2), %s298_s7, 64  }
  0xa0   : > { %1068 = vsyncadd (%p1322_p2), %s298_s7, 4294967232  ;;  %p1516_p4 = scmp.ne.s32.totalorder %s1503_s28, 0 }
  0xa2   : > { %1070 = dma.done.wait (%p1516_p4), [#allocation6], 272  }
  0xa3   : > { %1072 = vsyncadd (%p1516_p4), [#allocation6], 4294967024 }
  0xa4   : > { %1074 = dma.done.wait (%p1516_p4), [#allocation9], 272  }
  0xa5   : > { %1076 = vsyncadd (%p1516_p4), [#allocation9], 4294967024  ;;  %v1116_v0 = vmov 0.0   ;;  %vm1117_vm0 = vmmov 0   ;;  %v839_v1 = vld [vmem:[#allocation5] sm:$0xff]   ;;  %v840_v2 = vld [vmem:[#allocation8] sm:$0xff]  }
  0xa6   : > { %711 = vmatprep.subr.bf16.mxu0 %v1116_v0  ;;  %719 = vmatprep.subr.bf16.mxu1 %v1116_v0  ;;  %v841_v3 = vld [vmem:[#allocation5 + $0x8] sm:$0xff]   ;;  %v842_v4 = vld [vmem:[#allocation8 + $0x8] sm:$0xff]   ;;  %vm376_vm1 = vcmask 261120   ;;  %v691_v6 = vld [vmem:[#allocation7] ss:$0 sm:$0xff]  ;;  %s701_s28 = sshll.u32 %s1099_s24, 6 }
  0xa7   : > { %715 = vmatprep.mubr.msk.bf16.mxu0 %vm1117_vm0, %v1116_v0  ;;  %723 = vmatprep.mubr.msk.bf16.mxu1 %vm1117_vm0, %v1116_v0  ;;  %v352_v5 = vld [vmem:[%s301_s10] sm:$0xf]  ;;  %v695_v7 = vld [vmem:[#allocation10] ss:$0 sm:$0xff]  ;;  %s343_s29 = scalar_lea.vmem [#allocation11], %s1384_s27  ;;  %s350_s9 = scalar_lea.vmem [#allocation12], %s1384_s27 }
  0xa8   : > { %712 = vmatpush3.bf16.msra.mxu0 %v839_v1  ;;  %720 = vmatpush3.bf16.msra.mxu1 %v840_v2  ;;  %s508_s15 = sshll.u32 %s343_s29, 4  ;;  %s522_s8 = sshll.u32 %s350_s9, 4  ;;  %vm484_vm2 = vcmask 257024   ;;  %s1410_s15 = int_to_ptr.vmem [resolvable:$true] %s508_s15  ;;  %s1417_s8 = int_to_ptr.vmem [resolvable:$true] %s522_s8 }
  0xa9   : > { %713 = vmatprep.subr.bf16.mxu0 %v1116_v0  ;;  %721 = vmatprep.subr.bf16.mxu1 %v1116_v0  ;;  %s1408_s20 = scalar_lea.hbm %s1495_s5, %s701_s28  ;;  %s1415_s30 = scalar_lea.hbm %s1496_s6, %s701_s28 }
  0xaa   : > { %s489_s12 = scalar_lea.sflag [#allocation4], %s1381_s1  ;;  %s985_s7 = scalar_lea.vmem %s1410_s15, 64 }
  0xab   : > { %p986_p2 = scmp.ne.s32.totalorder %s1410_s15, %s985_s7  ;;  %p1517_p9 = scmp.ne.s32.totalorder %s1512_s16, 0 }
  0xac   : > { %714 = vmatpush3.bf16.msra.mxu0 %v841_v3  ;;  %722 = vmatpush3.bf16.msra.mxu1 %v842_v4  ;;  %s1118_s10 = smov [#allocation11]  }
  0xad   : > { %p987_p10 = pnand %p986_p2, %p1517_p9  ;;  %s989_s13 = sshll.u32 %s1118_s10, 4  ;;  %s990_s13 = int_to_ptr.vmem [resolvable:$false] %s989_s13 }
  0xae   : > { %s991_s14 = scalar_lea.vmem %s990_s13, 128  ;;  %p992_p0 = scmp.lt.s32.totalorder %s1410_s15, %s990_s13 }
  0xaf   : > { %716 = vmatmul.mubr.msk.bf16.vlgmr.msra.gmra.mrb[0].mxu0 %vm376_vm1, %v352_v5  ;;  %724 = vmatmul.mubr.msk.bf16.vlgmr.msra.gmra.mrb[0].mxu1 %vm376_vm1, %v352_v5  ;;  %p988_p11 = pneg %p987_p10  ;;  %p993_p7 = scmp.lt.s32.totalorder %s991_s14, %s985_s7 }
  0xb1   : > { %p994_p5 = por %p993_p7, %p992_p0 }
  0xb3   : > { %p995_p8 = pnand %p994_p5, %p988_p11 }
 0x182   : > { %v414_v8 = vpop.f32.mrb[0].mxu0  ;;  %v477_v10 = vpop.f32.mrb[0].mxu1 }
 0x183   : > { %v415_v9 = vadd.f32 %v691_v6, %v414_v8  ;;  %v717_v11 = vpop.f32.mrb[1].mxu0  ;;  %v478_v12 = vadd.f32 %v695_v7, %v477_v10  ;;  %v725_v13 = vpop.f32.mrb[1].mxu1 }
 0x184   : > { %v417_v14 = vpop.f32.mrb[2].mxu0  ;;  %v480_v16 = vpop.f32.mrb[2].mxu1 }
 0x185   : > { %v483_v15 = vpack.c.bf16 %v415_v9, %v415_v9  ;;  %v718_v17 = vpop.f32.mrb[3].mxu0  ;;  %v486_v18 = vpack.c.bf16 %v478_v12, %v478_v12  ;;  %v726_v19 = vpop.f32.mrb[3].mxu1 }
 0x187   : > { %485 = vst.msk [vmem:[%s343_s29] sm:$0xf] %vm484_vm2, %v483_v15 }
 0x188   : > { %998 = shalt.err (!%p995_p8)
}
 0x189   : > { %s999_s28 = scalar_lea.hbm %s1408_s20, 64  ;;  %s1003_s18 = scalar_lea.hbm %s1495_s5, 128 }
 0x18a   : > { %p1000_p1 = scmp.ne.s32.totalorder %s1408_s20, %s999_s28  ;;  %p1004_p13 = scmp.lt.u32.totalorder %s1408_s20, %s1495_s5 }
 0x18b   : > { %p1005_p12 = scmp.lt.u32.totalorder %s1003_s18, %s999_s28  ;;  %p1007_p2 = scmp.lt.u32.totalorder %s999_s28, %s1408_s20 }
 0x18c   : > { %p1001_p3 = pnand %p1000_p1, %p1517_p9 }
 0x18d   : > { %p1006_p4 = por %p1005_p12, %p1004_p13 }
 0x18e   : > { %p1002_p6 = pneg %p1001_p3 }
 0x18f   : > { %p1008_p10 = por %p1007_p2, %p1006_p4 }
 0x191   : > { %p1009_p11 = pnand %p1008_p10, %p1002_p6 }
 0x193   : > { %1012 = shalt.err (!%p1009_p11)
}
 0x194   : > { %745 = dma.vmem_to_hbm [thread:$0]  (%p1517_p9), %s1410_s15, 64, %s1408_s20, %s489_s12   ;;  %487 = vst.msk [vmem:[%s350_s9] sm:$0xf] %vm484_vm2, %v486_v18 }
 0x195   : > { %s494_s7 = scalar_lea.sflag [#allocation13], %s1381_s1  ;;  %s1013_s14 = scalar_lea.vmem %s1417_s8, 64 }
 0x196   : > { %p1014_p0 = scmp.ne.s32.totalorder %s1417_s8, %s1013_s14  ;;  %s1119_s28 = smov [#allocation12]  }
 0x197   : > { %s1017_s29 = sshll.u32 %s1119_s28, 4  ;;  %s1018_s29 = int_to_ptr.vmem [resolvable:$false] %s1017_s29 }
 0x198   : > { %p1015_p7 = pnand %p1014_p0, %p1517_p9  ;;  %s1019_s24 = scalar_lea.vmem %s1018_s29, 128 }
 0x199   : > { %p1020_p8 = scmp.lt.s32.totalorder %s1417_s8, %s1018_s29  ;;  %p1021_p1 = scmp.lt.s32.totalorder %s1019_s24, %s1013_s14 }
 0x19a   : > { %p1016_p5 = pneg %p1015_p7 }
 0x19b   : > { %p1022_p3 = por %p1021_p1, %p1020_p8 }
 0x19d   : > { %p1023_p6 = pnand %p1022_p3, %p1016_p5 }
 0x19f   : > { %1026 = shalt.err (!%p1023_p6)
}
 0x1a0   : > { %s1027_s1 = scalar_lea.hbm %s1415_s30, 64  ;;  %s1031_s9 = scalar_lea.hbm %s1496_s6, 128 }
 0x1a1   : > { %p1028_p13 = scmp.ne.s32.totalorder %s1415_s30, %s1027_s1  ;;  %p1032_p2 = scmp.lt.u32.totalorder %s1415_s30, %s1496_s6 }
 0x1a2   : > { %p1033_p10 = scmp.lt.u32.totalorder %s1031_s9, %s1027_s1  ;;  %p1035_p0 = scmp.lt.u32.totalorder %s1027_s1, %s1415_s30 }
 0x1a3   : > { %p1029_p12 = pnand %p1028_p13, %p1517_p9 }
 0x1a4   : > { %p1034_p11 = por %p1033_p10, %p1032_p2 }
 0x1a5   : > { %p1030_p4 = pneg %p1029_p12 }
 0x1a6   : > { %p1036_p7 = por %p1035_p0, %p1034_p11 }
 0x1a8   : > { %p1037_p5 = pnand %p1036_p7, %p1030_p4 }
 0x1aa   : > { %1040 = shalt.err (!%p1037_p5)
}
 0x1ab   : > { %746 = dma.vmem_to_hbm [thread:$0]  (%p1517_p9), %s1417_s8, 64, %s1415_s30, %s494_s7  }
 0x1ac PF: > { %s534_s18 = sand.u32 1, %s1087_s21   ;;  %p1518_p8 = scmp.ne.s32.totalorder %s1513_s19, 0 }
 0x1ad   : > { %p1519_p1 = scmp.ge.s32.totalorder %s1107_s26, 2  ;;  %s535_s10 = scalar_lea.sflag [#allocation4], %s534_s18 }
 0x1af   : > { %p767_p3 = pnand %p1519_p1, %p1518_p8 }
 0x1b1   : > { %1078 = dma.done.wait (!%p767_p3), %s535_s10, 64  }
 0x1b2   : > { %1080 = vsyncadd (!%p767_p3), %s535_s10, 4294967232  ;;  %s544_s13 = scalar_lea.sflag [#allocation13], %s534_s18 }
 0x1b3   : > { %1082 = dma.done.wait (!%p767_p3), %s544_s13, 64  }
 0x1b4   : > { %1084 = vsyncadd (!%p767_p3), %s544_s13, 4294967232  ;;  %s28_s26 = sadd.s32 1, %s1107_s26   ;;  %s1520_s21 = smov %s1091_s22 }
 0x1b5   : > { %p25_p6 = scmp.ge.s32.totalorder %s28_s26, 4   ;;  %s1521_s22 = smov %s1095_s23 }
 0x1b6   : > { %s1522_s23 = smov %s1331_s17  ;;  %s1523_s24 = smov %s1103_s25 }
 0x1b7   : > { %s1524_s25 = smov %s1526_s11  ;;  %27 = sbr.rel (!%p25_p6) target bundleno = 12 (0xc), region = 118 }
 0x1be   :  { %549 = vsyncpa [#allocation3], 1 }
 0x1bf   :  { %551 = vsyncpa [#allocation3 + $0x1], 1 }
 0x1c0   :  { %552 = vsyncpa [#allocation6], 1 }
 0x1c1   :  { %553 = vsyncpa [#allocation9], 1 }
 0x1c2   :  { %554 = vsyncpa [#allocation4], 1 }
 0x1c3   :  { %556 = vsyncpa [#allocation4 + $0x1], 1 }
 0x1c4   :  { %557 = vsyncpa [#allocation13], 1 }
 0x1c5   :  { %559 = vsyncpa [#allocation13 + $0x1], 1 }

</bundles_post_ra>
